<compile_context>
chip_gen: v6e
topology: v6e:2x2x1
jax: 0.10.0
libtpu: 0.0.40
codegen_flags: <defaults>
</compile_context>

<pallas_src>
import functools

import jax
import jax.numpy as jnp
from jax.experimental import pallas as pl
from jax.experimental.pallas import tpu as pltpu

_SUBLANE = 8  # f32 sublane granularity for the batch tile


def _round_up(n, m):
    return (n + m - 1) // m * m


def _net_kernel(x_ref, w1_ref, b1_ref, w2_ref, b2_ref, out_ref):
    # fc1: bf16 MXU matmul, f32 accumulation. Cast x in-kernel (casting in the
    # wrapper would add a separate, un-hidden XLA pass over the activations).
    x = x_ref[...].astype(jnp.bfloat16)
    h = jnp.dot(x, w1_ref[...], preferred_element_type=jnp.float32)
    h = jnp.maximum(h + b1_ref[...], 0.0)          # b1 broadcasts [1, H]

    # fc2 over the true (unpadded) hidden dim.
    y = jnp.dot(h.astype(jnp.bfloat16), w2_ref[...],
                preferred_element_type=jnp.float32)
    y = y + b2_ref[...]                            # b2 broadcasts [1, A]

    # Numerically stable softmax over the action axis (dim=1 in torch).
    y_max = jnp.max(y, axis=-1, keepdims=True)
    e = jnp.exp(y - y_max)
    denom = jnp.sum(e, axis=-1, keepdims=True)
    # Exact reciprocal: rows sum to 1 to f32 accuracy (downstream RL sampling).
    out_ref[...] = (e / denom).astype(out_ref.dtype)


@functools.partial(jax.jit, static_argnames=("tile_b",))
def net_forward(x, w1, b1, w2, b2, *, tile_b=2048):
    """x: [B, F], w1: [F, H], b1: [1, H], w2: [H, A], b2: [1, A] -> [B, A]."""
    B, F = x.shape
    H = w1.shape[1]
    A = w2.shape[1]

    # Weights are tiny and VMEM-resident: cast to bf16 once so both dots take
    # the fast bf16 MXU path (f32 accumulation is preserved in-kernel).
    w1b = w1.astype(jnp.bfloat16)
    w2b = w2.astype(jnp.bfloat16)

    out_shape = jax.ShapeDtypeStruct((B, A), jnp.float32)

    if B <= tile_b:
        # Single tile: no grid, no pipeline machinery, no padding or slicing.
        return pl.pallas_call(
            _net_kernel,
            out_shape=out_shape,
            in_specs=[pl.BlockSpec(memory_space=pltpu.MemorySpace.VMEM)] * 5,
            out_specs=pl.BlockSpec(memory_space=pltpu.MemorySpace.VMEM),
        )(x, w1b, b1, w2b, b2)

    # Batched path: 1-D "parallel" grid over batch tiles. The ragged last tile
    # is handled by Pallas (out-of-bounds rows are skipped on store). Keep the
    # tile count even so v7x can shard the grid axis across both TensorCores;
    # on v5e/v6e the grid is a serial loop, so large tiles amortize the
    # ~0.35 us per-step overhead.
    num_tiles = pl.cdiv(B, tile_b)
    if num_tiles > 1 and num_tiles % 2 == 1:
        num_tiles += 1
    tb = _round_up(pl.cdiv(B, num_tiles), _SUBLANE)
    num_tiles = pl.cdiv(B, tb)

    return pl.pallas_call(
        _net_kernel,
        out_shape=out_shape,
        grid=(num_tiles,),
        in_specs=[
            pl.BlockSpec((tb, F), lambda i: (i, 0)),
            pl.BlockSpec((F, H), lambda i: (0, 0)),   # weights stay VMEM-resident
            pl.BlockSpec((1, H), lambda i: (0, 0)),
            pl.BlockSpec((H, A), lambda i: (0, 0)),
            pl.BlockSpec((1, A), lambda i: (0, 0)),
        ],
        out_specs=pl.BlockSpec((tb, A), lambda i: (i, 0)),
        compiler_params=pltpu.CompilerParams(
            dimension_semantics=("parallel",),
        ),
    )(x, w1b, b1, w2b, b2)


def init_params(key, feature_numbers, neuron_nums, action_numbers):
    """Synthetic init mirroring the PyTorch module (weights ~ N(0, 0.1)).

    PyTorch fc.weight is [out, in]; we store the transpose [in, out] so the
    kernel computes x @ w directly on the MXU.
    """
    k1, k2, k3, k4 = jax.random.split(key, 4)
    w1 = (0.1 * jax.random.normal(k1, (feature_numbers, neuron_nums))).astype(jnp.float32)
    b1 = (0.1 * jax.random.normal(k2, (1, neuron_nums))).astype(jnp.float32)
    w2 = (0.1 * jax.random.normal(k3, (neuron_nums, action_numbers))).astype(jnp.float32)
    b2 = (0.1 * jax.random.normal(k4, (1, action_numbers))).astype(jnp.float32)
    return w1, b1, w2, b2


def _reference(x, w1, b1, w2, b2):
    h = jnp.maximum(x @ w1 + b1, 0.0)
    return jax.nn.softmax(h @ w2 + b2, axis=1)


if __name__ == "__main__":
    feature_numbers = 16
    neuron_nums = 32     # config['neuron_nums'] in the original module
    action_numbers = 8

    key = jax.random.PRNGKey(0)
    kx, kp, kx2 = jax.random.split(key, 3)
    w1, b1, w2, b2 = init_params(kp, feature_numbers, neuron_nums, action_numbers)

    # (1) Tiny batch matching typical RL inference -> single-tile, no-grid path
    #     (no padding, no slicing, minimal fixed cost).
    x_small = jax.random.normal(kx, (2, feature_numbers), dtype=jnp.float32)
    out_small = jax.block_until_ready(net_forward(x_small, w1, b1, w2, b2))
    ref_small = _reference(x_small, w1, b1, w2, b2)
    assert out_small.shape == (2, action_numbers)
    # bf16 MXU inputs -> compare against the f32 reference with a loose atol.
    assert jnp.allclose(out_small, ref_small, atol=1e-2, rtol=1e-2)
    assert jnp.allclose(jnp.sum(out_small, axis=1), 1.0, atol=1e-4)

    # (2) Larger ragged batch exercising the tiled, batch-parallel grid path
    #     (even tile count, masked ragged last tile, no wrapper pad/slice).
    x_big = jax.random.normal(kx2, (2500, feature_numbers), dtype=jnp.float32)
    out_big = jax.block_until_ready(net_forward(x_big, w1, b1, w2, b2, tile_b=512))
    ref_big = _reference(x_big, w1, b1, w2, b2)
    assert out_big.shape == (2500, action_numbers)
    assert jnp.allclose(out_big, ref_big, atol=1e-2, rtol=1e-2)
    assert jnp.allclose(jnp.sum(out_big, axis=1), 1.0, atol=1e-4)

    print("KERNEL_OK")
</pallas_src>

<mosaic_0001>
module attributes {stable_mosaic.version = 11 : i64} {
  func.func @_net_kernel(%arg0: memref<2x16xf32, #tpu.memory_space<vmem>>, %arg1: memref<16x32xbf16, #tpu.memory_space<vmem>>, %arg2: memref<1x32xf32, #tpu.memory_space<vmem>>, %arg3: memref<32x8xbf16, #tpu.memory_space<vmem>>, %arg4: memref<1x8xf32, #tpu.memory_space<vmem>>, %arg5: memref<2x8xf32, #tpu.memory_space<vmem>>) attributes {dimension_semantics = [], scalar_prefetch = 0 : i64, scratch_operands = 0 : i64, tpu.core_type = #tpu.core_type<tc>} {
    %c0 = arith.constant 0 : index
    %c0_0 = arith.constant 0 : index
    %0 = vector.load %arg0[%c0, %c0_0] : memref<2x16xf32, #tpu.memory_space<vmem>>, vector<2x16xf32>
    %1 = arith.truncf %0 : vector<2x16xf32> to vector<2x16xbf16>
    %c0_1 = arith.constant 0 : index
    %c0_2 = arith.constant 0 : index
    %2 = vector.load %arg1[%c0_1, %c0_2] : memref<16x32xbf16, #tpu.memory_space<vmem>>, vector<16x32xbf16>
    %cst = arith.constant dense<0.000000e+00> : vector<2x32xf32>
    %3 = tpu.matmul %1, %2, %cst {dimension_numbers = #tpu.dot_dimension_numbers<[1], [0], [0], [1], [0, 0, 1, 1], [], []>} : vector<2x16xbf16>, vector<16x32xbf16>, vector<2x32xf32> -> vector<2x32xf32>
    %c0_3 = arith.constant 0 : index
    %c0_4 = arith.constant 0 : index
    %4 = vector.load %arg2[%c0_3, %c0_4] : memref<1x32xf32, #tpu.memory_space<vmem>>, vector<1x32xf32>
    %5 = vector.broadcast %4 : vector<1x32xf32> to vector<2x32xf32>
    %6 = arith.addf %3, %5 : vector<2x32xf32>
    %cst_5 = arith.constant 0.000000e+00 : f32
    %7 = vector.broadcast %cst_5 : f32 to vector<2x32xf32>
    %8 = arith.maximumf %6, %7 : vector<2x32xf32>
    %9 = arith.truncf %8 : vector<2x32xf32> to vector<2x32xbf16>
    %c0_6 = arith.constant 0 : index
    %c0_7 = arith.constant 0 : index
    %10 = vector.load %arg3[%c0_6, %c0_7] : memref<32x8xbf16, #tpu.memory_space<vmem>>, vector<32x8xbf16>
    %cst_8 = arith.constant dense<0.000000e+00> : vector<2x8xf32>
    %11 = tpu.matmul %9, %10, %cst_8 {dimension_numbers = #tpu.dot_dimension_numbers<[1], [0], [0], [1], [0, 0, 1, 1], [], []>} : vector<2x32xbf16>, vector<32x8xbf16>, vector<2x8xf32> -> vector<2x8xf32>
    %c0_9 = arith.constant 0 : index
    %c0_10 = arith.constant 0 : index
    %12 = vector.load %arg4[%c0_9, %c0_10] : memref<1x8xf32, #tpu.memory_space<vmem>>, vector<1x8xf32>
    %13 = vector.broadcast %12 : vector<1x8xf32> to vector<2x8xf32>
    %14 = arith.addf %11, %13 : vector<2x8xf32>
    %cst_11 = arith.constant dense<0xFF800000> : vector<2xf32>
    %15 = vector.multi_reduction <maximumf>, %14, %cst_11 [1] : vector<2x8xf32> to vector<2xf32>
    %16 = vector.shape_cast %15 : vector<2xf32> to vector<2x1xf32>
    %17 = vector.broadcast %16 : vector<2x1xf32> to vector<2x8xf32>
    %18 = arith.subf %14, %17 : vector<2x8xf32>
    %19 = math.exp %18 : vector<2x8xf32>
    %cst_12 = arith.constant dense<0.000000e+00> : vector<2xf32>
    %20 = vector.multi_reduction <add>, %19, %cst_12 [1] : vector<2x8xf32> to vector<2xf32>
    %21 = vector.shape_cast %20 : vector<2xf32> to vector<2x1xf32>
    %22 = vector.broadcast %21 : vector<2x1xf32> to vector<2x8xf32>
    %23 = arith.divf %19, %22 : vector<2x8xf32>
    %c0_13 = arith.constant 0 : index
    %c0_14 = arith.constant 0 : index
    %24 = vector.load %arg5[%c0_13, %c0_14] : memref<2x8xf32, #tpu.memory_space<vmem>>, vector<2x8xf32>
    tpu.vector_store %arg5[%c0_13, %c0_14], %23 {strides = array<i32>} : memref<2x8xf32, #tpu.memory_space<vmem>>, vector<2x8xf32>,
    return
  }
}

</mosaic_0001>

<bundles_post_ra>
// kernel: net_forward.1
= control target key start
LH: loop header
LB: loop body
LE: loop exit
PB: predicated region body
PF: predicated region fallthrough
CT: control target
= control target key end

     0   :  { %v237_v1 = vmov 0.0   ;;  %vm39_vm0 = vcmask 130048   ;;  %vm238_vm1 = vmmov 0   ;;  %s294_s0 = inlined_call_operand.vmem [shape: f32[2,16], index: 0, kind: input, shape index: {}]   ;;  %s295_s1 = inlined_call_operand.vmem [shape: bf16[16,32], index: 1, kind: input, shape index: {}]   ;;  %s296_s2 = inlined_call_operand.vmem [shape: f32[1,32], index: 2, kind: input, shape index: {}]   ;;  %s297_s3 = inlined_call_operand.vmem [shape: bf16[32,8], index: 3, kind: input, shape index: {}]   ;;  %s298_s4 = inlined_call_operand.vmem [shape: f32[1,8], index: 4, kind: input, shape index: {}]   ;;  %s299_s5 = inlined_call_operand.hbm [shape: f32[2,8], index: 5, kind: output, shape index: {}]  }
   0x1   :  { %v208_v0 = vld [vmem:[%s295_s1] sm:$0xff]   ;;  %191 = vmatprep.subr.bf16.mxu0 %v237_v1  ;;  %197 = vmatprep.subr.bf16.mxu1 %v237_v1 }
   0x2   :  { %v22_v2 = vld [vmem:[%s294_s0] sm:$0x3]  ;;  %192 = vmatpush3.bf16.msra.mxu0 %v208_v0  ;;  %193 = vmatprep.mubr.msk.bf16.mxu0 %vm238_vm1, %v237_v1 }
   0x3   :  { %v23_v3 = vpack.c.bf16 %v22_v2, %v22_v2  ;;  %201 = vmatprep.mubr.msk.bf16.mxu1 %vm238_vm1, %v237_v1 }
   0x4   :  { %10 = vsyncpa [#allocation3], 0  ;;  %v209_v4 = vld [vmem:[%s297_s3 + $0x8] sm:$0xff]   ;;  %v210_v5 = vld [vmem:[%s297_s3] sm:$0xff]   ;;  %vm108_vm2 = vcmask 261120   ;;  %vm152_vm3 = vcmask 58368  }
   0x5   :  { %194 = vmatmul.mubr.msk.bf16.vlgmr.msra.gmra.mxu0 %vm39_vm0, %v23_v3  ;;  %198 = vmatpush3.bf16.msra.mxu1 %v209_v4  ;;  %v179_v6 = vld [vmem:[%s296_s2] ss:$0 sm:$0xff]  ;;  %s239_s2 = smov [#allocation2]  }
   0x6   :  { %199 = vmatprep.subr.bf16.mxu1 %v237_v1  ;;  %v182_v14 = vld [vmem:[%s298_s4] ss:$0 sm:$0xff]  ;;  %s171_s3 = sshll.u32 %s239_s2, 4  ;;  %s172_s3 = int_to_ptr.vmem [resolvable:$true] %s171_s3 }
   0x7   :  { %s215_s4 = scalar_lea.vmem %s172_s3, 32  ;;  %p220_p1 = scmp.lt.s32.totalorder %s172_s3, %s172_s3 }
   0x8   :  { %p216_p0 = scmp.ne.s32.totalorder %s172_s3, %s215_s4  ;;  %p221_p2 = scmp.lt.s32.totalorder %s215_s4, %s215_s4 }
   0x9   :  { %200 = vmatpush3.bf16.msra.mxu1 %v210_v5 }
   0xa   :  { %p222_p3 = por %p221_p2, %p220_p1 }
   0xc   :  { %p223_p4 = pnand %p222_p3, %p216_p0 }
  0xc5   :  { %v77_v7 = vpop.f32.mrf.mxu0 }
  0xc6   :  { %v78_v8 = vadd.f32 %v179_v6, %v77_v7 }
  0xc7   :  { %v195_v9 = vpop.f32.mrf.mxu0 }
  0xc8   :  { %v83_v10 = vmax.f32 %v78_v8, 0.0 }
  0xc9   :  { %v80_v11 = vpop.f32.mrf.mxu0 }
  0xca   :  { %v84_v12 = vpack.c.bf16 %v83_v10, %v83_v10 }
  0xcb   :  { %v196_v13 = vpop.f32.mrf.mxu0 }
  0xcc   :  { %202 = vmatmul.mubr.msk.bf16.vlgmr.msra.gmra.mxu1 %vm108_vm2, %v84_v12 }
 0x18c   :  { %v146_v15 = vpop.f32.mrf.mxu1 }
 0x18d   :  { %v147_v16 = vadd.f32 %v182_v14, %v146_v15 }
 0x18e   :  { %v203_v17 = vpop.f32.mrf.mxu1 }
 0x18f   :  { %v153_v18 = vsel %vm152_vm3, %v147_v16, -inf }
 0x190   :  { %154 = vmax.xlane.f32.xlu0 %v153_v18  ;;  %v149_v19 = vpop.f32.mrf.mxu1 }
 0x192   :  { %v204_v20 = vpop.f32.mrf.mxu1 }
 0x219   :  { %v155_v21 = vpop.xlane.xlu0 %154 }
 0x21a   :  { %v156_v22 = vsub.f32 %v147_v16, %v155_v21 }
 0x21c   :  { %v157_v23 = vmul.f32 1.442695, %v156_v22 }
 0x21e   :  { %211 = vpow2.f32 %v157_v23 }
 0x22b   :  { %v212_v24 = vpop.eup %211 }
 0x22c   :  { %v159_v25 = vsel %vm152_vm3, %v212_v24, 0.0 }
 0x22d   :  { %160 = vadd.xlane.f32.xlu0 %v159_v25 }
 0x2b6   :  { %v161_v26 = vpop.xlane.xlu0 %160 }
 0x2b7   :  { %213 = vrcp.f32 %v161_v26 }
 0x2c4   :  { %v214_v27 = vpop.eup %213 }
 0x2c5   :  { %v163_v28 = vmul.f32 %v214_v27, %v212_v24 }
 0x2c7   :  { %164 = vst.msk [vmem:[#allocation2] sm:$0x3] %vm152_vm3, %v163_v28 }
 0x2c8   :  { %226 = shalt.err (!%p223_p4)
}
 0x2c9   :  { %174 = dma.vmem_to_hbm [thread:$0]  %s172_s3, 32, %s299_s5, [#allocation3]  }
 0x2ca   :  { %235 = dma.done.wait [#allocation3], 32  }
 0x2cb   :  { %236 = vsyncadd [#allocation3], 4294967264 }
 0x2cc   :  { %178 = vsyncpa [#allocation3], 1 }

</bundles_post_ra>
